<compile_context>
chip_gen: v6e
topology: v6e:2x2x1
jax: 0.10.0
libtpu: 0.0.40
codegen_flags: <defaults>
</compile_context>

<pallas_src>
import math

import jax
import jax.numpy as jnp
from jax.experimental import pallas as pl
from jax.experimental.pallas import tpu as pltpu


def _mlp_kernel(x_ref, w1_ref, b1_ref, w2_ref, b2_ref, w3_ref, b3_ref, o_ref):
    # Layer 1: cast the f32 x tile to bf16 in VMEM (no separate HBM pass),
    # then (tb, D) @ (D, H) on the MXU with f32 accumulation.
    x_b = x_ref[...].astype(jnp.bfloat16)
    h1 = jnp.dot(x_b, w1_ref[...], preferred_element_type=jnp.float32)
    h1 = h1 + b1_ref[...]                     # f32 bias
    h1 = jnp.where(h1 > 0, h1, 0.2 * h1)      # LeakyReLU(0.2) on the VPU (f32)

    # Layer 2: (tb, H) @ (H, Z) on the MXU; bf16 operands, f32 accumulation.
    h2 = jnp.dot(h1.astype(jnp.bfloat16), w2_ref[...],
                 preferred_element_type=jnp.float32)
    h2 = h2 + b2_ref[...]
    h2 = jnp.where(h2 > 0, h2, 0.2 * h2)

    # Layer 3: (tb, 20) @ (20, 1) is far too small for the MXU -- do it as an
    # elementwise multiply + cross-lane reduce on the VPU/XLU (otherwise idle).
    # w3_ref holds w3 transposed to a (1, Z) row; b3_ref is (1, 1).
    h3 = jnp.sum(h2 * w3_ref[...], axis=-1, keepdims=True) + b3_ref[...]
    o_ref[...] = h3.astype(o_ref.dtype)


def _round_up(n, m):
    return -(-n // m) * m


def _pick_batch_tile(B):
    """Batch-tile selection (perf-review items 2 & 3).

    * B < 32   : one tile, rounded up to the 8-row sublane multiple.
    * 32<=B<512: ~B/2 rounded up to 16 -> two grid steps, so both v7x
                 TensorCores get work even at small/medium batch.
    * B >= 512 : 256-aligned tiles capped at 1024, always >= 2 steps.
    The wrapper pads B up to a multiple of the tile, so the tile never has to
    divide B exactly (no tb == B fallback).
    """
    if B < 32:
        return _round_up(B, 8)
    if B < 512:
        return max(16, _round_up(-(-B // 2), 16))
    half = B // 2
    return min(1024, max(256, (half // 256) * 256))


def _spec(shape, index_map, buffers=None):
    """BlockSpec with an optional pipeline_mode=pl.Buffered(n) buffering hint.

    buffers=1 keeps constant-index weight blocks single-buffered (saves the
    second w1 copy in VMEM); buffers=3 deepens the streaming-x pipeline on
    mem-leaning parts (v6e).  Falls back to a plain BlockSpec if this JAX
    build lacks the hint, so it can never break compilation.
    """
    if buffers is not None:
        try:
            return pl.BlockSpec(shape, index_map,
                                pipeline_mode=pl.Buffered(buffers))
        except (AttributeError, TypeError):
            pass
    return pl.BlockSpec(shape, index_map)


def prepare_params(params):
    """One-time conversion of (w, b) params into the kernel operand layout:
    bf16 w1/w2 (MXU operands), f32 (1, Z) row for w3, f32 (1, N) biases.
    Callers that invoke the forward repeatedly should apply this once and
    reuse the result (small-batch calls are weight-traffic bound)."""
    w1, b1, w2, b2, w3, b3 = params
    return (
        w1.astype(jnp.bfloat16),
        jnp.asarray(b1, jnp.float32).reshape(1, -1),
        w2.astype(jnp.bfloat16),
        jnp.asarray(b2, jnp.float32).reshape(1, -1),
        jnp.transpose(w3).astype(jnp.float32),   # (1, Z) row for the VPU layer
        jnp.asarray(b3, jnp.float32).reshape(1, -1),
    )


def critic_fc_forward(x_nchw, params, att_type=None, *, batch_tile=None):
    """critic_FC forward. x_nchw: (B, C, H, W) float32. `att_type` is ignored
    (as in the PyTorch module)."""
    del att_type
    w1, b1, w2, b2, w3, b3 = params
    B = x_nchw.shape[0]
    D, H = w1.shape
    Z = w2.shape[1]
    O = w3.shape[1]

    # flatten(x): (B, C*H*W), row-major like torch.view. Kept in f32 -- the
    # bf16 cast happens on the tile inside the kernel (no extra HBM pass).
    x2d = x_nchw.reshape(B, -1).astype(jnp.float32)
    assert x2d.shape[1] == D, f"flattened dim {x2d.shape[1]} != image_size {D}"

    w1_b, b1_f, w2_b, b2_f, w3_row, b3_f = prepare_params(
        (w1, b1, w2, b2, w3, b3))

    tb = _pick_batch_tile(B) if batch_tile is None else batch_tile
    assert tb % 8 == 0, f"batch_tile {tb} must be a multiple of 8"

    # Pad the batch up to a multiple of the tile (padded rows are junk and
    # sliced off below) -- replaces the old tb == B fallback.
    B_pad = _round_up(B, tb)
    if B_pad != B:
        x2d = jnp.pad(x2d, ((0, B_pad - B), (0, 0)))

    num_steps = B_pad // tb
    # Triple-buffer the streaming x tile only when there are enough steps for
    # it to matter; weights/biases never revolve -> single buffer.
    x_buffers = 3 if num_steps >= 3 else 2

    out = pl.pallas_call(
        _mlp_kernel,
        out_shape=jax.ShapeDtypeStruct((B_pad, O), jnp.float32),
        grid=(num_steps,),
        in_specs=[
            _spec((tb, D), lambda i: (i, 0), x_buffers),   # x tile (streams)
            _spec((D, H), lambda i: (0, 0), 1),            # w1 (resident)
            _spec((1, H), lambda i: (0, 0), 1),            # b1
            _spec((H, Z), lambda i: (0, 0), 1),            # w2
            _spec((1, Z), lambda i: (0, 0), 1),            # b2
            _spec((1, Z), lambda i: (0, 0), 1),            # w3 (as f32 row)
            _spec((1, O), lambda i: (0, 0), 1),            # b3
        ],
        out_specs=pl.BlockSpec((tb, O), lambda i: (i, 0)),
        compiler_params=pltpu.CompilerParams(
            # Batch axis is independent -> megacore-shardable on v7x. If a
            # trace shows the single axis not splitting, switch to
            # pltpu.CORE_PARALLEL.
            dimension_semantics=("parallel",),
            # Covers v5e's 16 MiB scoped default at tb=1024 (x tiles + w1 +
            # intermediates ~15 MiB); within physical VMEM on every gen.
            vmem_limit_bytes=32 * 1024 * 1024,
        ),
    )(x2d, w1_b, b1_f, w2_b, b2_f, w3_row, b3_f)

    if B_pad != B:
        out = out[:B]
    return out


def init_params(key, image_size=784, h_dim=400):
    """Deterministic init mimicking nn.Linear defaults (uniform +/- 1/sqrt(fan_in))."""
    dims = [(image_size, h_dim), (h_dim, 20), (20, 1)]
    params = []
    for fan_in, fan_out in dims:
        kw, kb, key = jax.random.split(key, 3)
        bound = 1.0 / math.sqrt(fan_in)
        w = jax.random.uniform(kw, (fan_in, fan_out), jnp.float32, -bound, bound)
        b = jax.random.uniform(kb, (1, fan_out), jnp.float32, -bound, bound)
        params += [w, b]
    return tuple(params)


def _reference_bf16(x_nchw, params):
    """Pure-JAX reference mirroring the kernel's bf16-operand / f32-accum math."""
    w1, b1, w2, b2, w3, b3 = params
    x = x_nchw.reshape(x_nchw.shape[0], -1)
    h = jnp.dot(x.astype(jnp.bfloat16), w1.astype(jnp.bfloat16),
                preferred_element_type=jnp.float32) + b1
    h = jnp.where(h > 0, h, 0.2 * h)
    h = jnp.dot(h.astype(jnp.bfloat16), w2.astype(jnp.bfloat16),
                preferred_element_type=jnp.float32) + b2
    h = jnp.where(h > 0, h, 0.2 * h)
    return jnp.dot(h, w3, preferred_element_type=jnp.float32) + b3


def _reference_f32(x_nchw, params):
    """All-f32 reference matching the original PyTorch forward exactly."""
    w1, b1, w2, b2, w3, b3 = params
    h = x_nchw.reshape(x_nchw.shape[0], -1)
    h = jnp.dot(h, w1) + b1
    h = jnp.where(h > 0, h, 0.2 * h)
    h = jnp.dot(h, w2) + b2
    h = jnp.where(h > 0, h, 0.2 * h)
    return jnp.dot(h, w3) + b3


if __name__ == "__main__":
    key = jax.random.PRNGKey(0)
    kx, kp = jax.random.split(key)

    # Small NCHW input consistent with image_size=784 (1 x 28 x 28).
    B, C, Hh, Ww = 32, 1, 28, 28
    x = jax.random.normal(kx, (B, C, Hh, Ww), jnp.float32)
    params = init_params(kp, image_size=C * Hh * Ww, h_dim=400)

    ref = _reference_bf16(x, params)
    ref_f32 = _reference_f32(x, params)

    # Default tiling for B=32 -> tb=16, grid=(2,): exercises the multi-step
    # pipelined / two-TensorCore path.
    out = jax.block_until_ready(critic_fc_forward(x, params))
    # Ragged batch (B=20 -> padded to 24 rows inside the wrapper).
    out_ragged = jax.block_until_ready(critic_fc_forward(x[:20], params))

    assert out.shape == (B, 1)
    assert out_ragged.shape == (20, 1)
    assert jnp.allclose(out, ref, atol=2e-3, rtol=2e-3), "multi-step mismatch"
    assert jnp.allclose(out_ragged, ref[:20], atol=2e-3, rtol=2e-3), "padded mismatch"
    # bf16-operand matmuls intentionally deviate from the all-f32 torch
    # forward by ~1e-3 relative; bound it loosely here.
    assert jnp.allclose(out, ref_f32, atol=1e-1, rtol=1e-1), "f32 semantics drifted"

    print("KERNEL_OK")
</pallas_src>

<mosaic_0001>
module attributes {stable_mosaic.version = 11 : i64} {
  func.func @_mlp_kernel(%arg0: i32, %arg1: memref<16x784xf32, #tpu.memory_space<vmem>>, %arg2: memref<784x400xbf16, #tpu.memory_space<vmem>>, %arg3: memref<1x400xf32, #tpu.memory_space<vmem>>, %arg4: memref<400x20xbf16, #tpu.memory_space<vmem>>, %arg5: memref<1x20xf32, #tpu.memory_space<vmem>>, %arg6: memref<1x20xf32, #tpu.memory_space<vmem>>, %arg7: memref<1x1xf32, #tpu.memory_space<vmem>>, %arg8: memref<16x1xf32, #tpu.memory_space<vmem>>) attributes {dimension_semantics = [#tpu.dimension_semantics<parallel>], iteration_bounds = array<i64: 2>, scalar_prefetch = 0 : i64, scratch_operands = 0 : i64, tpu.core_type = #tpu.core_type<tc>, window_params = [{pipeline_mode = #tpu.pipeline_mode<double_buffered>, transform_indices = @transform_0, window_bounds = array<i64: 16, 784>}, {pipeline_mode = #tpu.pipeline_mode<synchronous>, transform_indices = @transform_1, window_bounds = array<i64: 784, 400>}, {pipeline_mode = #tpu.pipeline_mode<synchronous>, transform_indices = @transform_2, window_bounds = array<i64: 1, 400>}, {pipeline_mode = #tpu.pipeline_mode<synchronous>, transform_indices = @transform_3, window_bounds = array<i64: 400, 20>}, {pipeline_mode = #tpu.pipeline_mode<synchronous>, transform_indices = @transform_4, window_bounds = array<i64: 1, 20>}, {pipeline_mode = #tpu.pipeline_mode<synchronous>, transform_indices = @transform_5, window_bounds = array<i64: 1, 20>}, {pipeline_mode = #tpu.pipeline_mode<synchronous>, transform_indices = @transform_6, window_bounds = array<i64: 1, 1>}, {transform_indices = @transform_7, window_bounds = array<i64: 16, 1>}]} {
    %c0 = arith.constant 0 : index
    %c0_0 = arith.constant 0 : index
    %0 = vector.load %arg1[%c0, %c0_0] : memref<16x784xf32, #tpu.memory_space<vmem>>, vector<16x784xf32>
    %1 = arith.truncf %0 : vector<16x784xf32> to vector<16x784xbf16>
    %c0_1 = arith.constant 0 : index
    %c0_2 = arith.constant 0 : index
    %2 = vector.load %arg2[%c0_1, %c0_2] : memref<784x400xbf16, #tpu.memory_space<vmem>>, vector<784x400xbf16>
    %cst = arith.constant dense<0.000000e+00> : vector<16x400xf32>
    %3 = tpu.matmul %1, %2, %cst {dimension_numbers = #tpu.dot_dimension_numbers<[1], [0], [0], [1], [0, 0, 1, 1], [], []>} : vector<16x784xbf16>, vector<784x400xbf16>, vector<16x400xf32> -> vector<16x400xf32>
    %c0_3 = arith.constant 0 : index
    %c0_4 = arith.constant 0 : index
    %4 = vector.load %arg3[%c0_3, %c0_4] : memref<1x400xf32, #tpu.memory_space<vmem>>, vector<1x400xf32>
    %5 = vector.broadcast %4 : vector<1x400xf32> to vector<16x400xf32>
    %6 = arith.addf %3, %5 : vector<16x400xf32>
    %cst_5 = arith.constant 0.000000e+00 : f32
    %7 = vector.broadcast %cst_5 : f32 to vector<16x400xf32>
    %8 = arith.cmpf ogt, %6, %7 : vector<16x400xf32>
    %cst_6 = arith.constant 2.000000e-01 : f32
    %9 = vector.broadcast %cst_6 : f32 to vector<16x400xf32>
    %10 = arith.mulf %9, %6 : vector<16x400xf32>
    %11 = arith.select %8, %6, %10 : vector<16x400xi1>, vector<16x400xf32>
    %12 = arith.truncf %11 : vector<16x400xf32> to vector<16x400xbf16>
    %c0_7 = arith.constant 0 : index
    %c0_8 = arith.constant 0 : index
    %13 = vector.load %arg4[%c0_7, %c0_8] : memref<400x20xbf16, #tpu.memory_space<vmem>>, vector<400x20xbf16>
    %cst_9 = arith.constant dense<0.000000e+00> : vector<16x20xf32>
    %14 = tpu.matmul %12, %13, %cst_9 {dimension_numbers = #tpu.dot_dimension_numbers<[1], [0], [0], [1], [0, 0, 1, 1], [], []>} : vector<16x400xbf16>, vector<400x20xbf16>, vector<16x20xf32> -> vector<16x20xf32>
    %c0_10 = arith.constant 0 : index
    %c0_11 = arith.constant 0 : index
    %15 = vector.load %arg5[%c0_10, %c0_11] : memref<1x20xf32, #tpu.memory_space<vmem>>, vector<1x20xf32>
    %16 = vector.broadcast %15 : vector<1x20xf32> to vector<16x20xf32>
    %17 = arith.addf %14, %16 : vector<16x20xf32>
    %cst_12 = arith.constant 0.000000e+00 : f32
    %18 = vector.broadcast %cst_12 : f32 to vector<16x20xf32>
    %19 = arith.cmpf ogt, %17, %18 : vector<16x20xf32>
    %cst_13 = arith.constant 2.000000e-01 : f32
    %20 = vector.broadcast %cst_13 : f32 to vector<16x20xf32>
    %21 = arith.mulf %20, %17 : vector<16x20xf32>
    %22 = arith.select %19, %17, %21 : vector<16x20xi1>, vector<16x20xf32>
    %c0_14 = arith.constant 0 : index
    %c0_15 = arith.constant 0 : index
    %23 = vector.load %arg6[%c0_14, %c0_15] : memref<1x20xf32, #tpu.memory_space<vmem>>, vector<1x20xf32>
    %24 = vector.broadcast %23 : vector<1x20xf32> to vector<16x20xf32>
    %25 = arith.mulf %22, %24 : vector<16x20xf32>
    %cst_16 = arith.constant dense<0.000000e+00> : vector<16xf32>
    %26 = vector.multi_reduction <add>, %25, %cst_16 [1] : vector<16x20xf32> to vector<16xf32>
    %27 = vector.shape_cast %26 : vector<16xf32> to vector<16x1xf32>
    %c0_17 = arith.constant 0 : index
    %c0_18 = arith.constant 0 : index
    %28 = vector.load %arg7[%c0_17, %c0_18] : memref<1x1xf32, #tpu.memory_space<vmem>>, vector<1x1xf32>
    %29 = vector.broadcast %28 : vector<1x1xf32> to vector<16x1xf32>
    %30 = arith.addf %27, %29 : vector<16x1xf32>
    %c0_19 = arith.constant 0 : index
    %c0_20 = arith.constant 0 : index
    %31 = vector.load %arg8[%c0_19, %c0_20] : memref<16x1xf32, #tpu.memory_space<vmem>>, vector<16x1xf32>
    tpu.vector_store %arg8[%c0_19, %c0_20], %30 {strides = array<i32>} : memref<16x1xf32, #tpu.memory_space<vmem>>, vector<16x1xf32>,
    return
  }
  func.func @transform_0(%arg0: i32) -> (i32, i32) {
    %c0_i32 = arith.constant 0 : i32
    %c0_i32_0 = arith.constant 0 : i32
    return %arg0, %c0_i32 : i32, i32
  }
  func.func @transform_1(%arg0: i32) -> (i32, i32) {
    %c0_i32 = arith.constant 0 : i32
    %c0_i32_0 = arith.constant 0 : i32
    %c0_i32_1 = arith.constant 0 : i32
    return %c0_i32, %c0_i32_0 : i32, i32
  }
  func.func @transform_2(%arg0: i32) -> (i32, i32) {
    %c0_i32 = arith.constant 0 : i32
    %c0_i32_0 = arith.constant 0 : i32
    %c0_i32_1 = arith.constant 0 : i32
    return %c0_i32, %c0_i32_0 : i32, i32
  }
  func.func @transform_3(%arg0: i32) -> (i32, i32) {
    %c0_i32 = arith.constant 0 : i32
    %c0_i32_0 = arith.constant 0 : i32
    %c0_i32_1 = arith.constant 0 : i32
    return %c0_i32, %c0_i32_0 : i32, i32
  }
  func.func @transform_4(%arg0: i32) -> (i32, i32) {
    %c0_i32 = arith.constant 0 : i32
    %c0_i32_0 = arith.constant 0 : i32
    %c0_i32_1 = arith.constant 0 : i32
    return %c0_i32, %c0_i32_0 : i32, i32
  }
  func.func @transform_5(%arg0: i32) -> (i32, i32) {
    %c0_i32 = arith.constant 0 : i32
    %c0_i32_0 = arith.constant 0 : i32
    %c0_i32_1 = arith.constant 0 : i32
    return %c0_i32, %c0_i32_0 : i32, i32
  }
  func.func @transform_6(%arg0: i32) -> (i32, i32) {
    %c0_i32 = arith.constant 0 : i32
    %c0_i32_0 = arith.constant 0 : i32
    %c0_i32_1 = arith.constant 0 : i32
    return %c0_i32, %c0_i32_0 : i32, i32
  }
  func.func @transform_7(%arg0: i32) -> (i32, i32) {
    %c0_i32 = arith.constant 0 : i32
    %c0_i32_0 = arith.constant 0 : i32
    return %arg0, %c0_i32 : i32, i32
  }
}

</mosaic_0001>

<bundles_post_ra>
// kernel: tpu_custom_call.1
= control target key start
LH: loop header
LB: loop body
LE: loop exit
PB: predicated region body
PF: predicated region fallthrough
CT: control target
= control target key end

     0   :  { %s2906_s26 = smov 0   ;;  %s3659_s0 = inlined_call_operand.vmem [shape: f32[32,784], index: 0, kind: input, shape index: {}]   ;;  %s3660_s1 = inlined_call_operand.vmem [shape: bf16[784,400], index: 1, kind: input, shape index: {}]   ;;  %s3661_s2 = inlined_call_operand.vmem [shape: f32[1,400], index: 2, kind: input, shape index: {}]   ;;  %s3662_s3 = inlined_call_operand.vmem [shape: bf16[400,20], index: 3, kind: input, shape index: {}]   ;;  %s3663_s4 = inlined_call_operand.vmem [shape: f32[1,20], index: 4, kind: input, shape index: {}]   ;;  %s3664_s5 = inlined_call_operand.vmem [shape: f32[1,20], index: 5, kind: input, shape index: {}]   ;;  %s3665_s6 = inlined_call_operand.<no memory space> [shape: f32[1,1], index: 6, kind: input, shape index: {}]   ;;  %s3666_s7 = inlined_call_operand.vmem [shape: f32[32,1], index: 7, kind: output, shape index: {}]  }
   0x1   :  { %v12_v0 = vstv %s3665_s6 }
   0x2   :  { %13 = vst [vmem:[#allocation2] sm:$0x1] %v12_v0 }
   0x3 LB: > { %s2265_s27 = sadd.s32 4294967295, %s2860_s26   ;;  %p2269_p0 = scmp.ge.s32.totalorder %s2860_s26, 1  ;;  %s2860_s26 = sphi %s2906_s26, %s19_s26  }
   0x4   : > { %p241_p1 = scmp.lt.s32.totalorder %s2860_s26, 3 }
   0x6   : > { %p242_p2 = pnand %p2269_p0, %p241_p1 }
   0x7   : > { %s2270_s18 = sshll.u32 (!%p242_p2), %s2265_s27, 1 }
   0x8   : > { %245 = sbr.rel (%p242_p2) target bundleno = 770 (0x302), region = 48  ;;  %p275_p3 = scmp.lt.s32.totalorder (!%p242_p2), %s2270_s18, 3 }
   0xd   : > { %v2535_v1 = vld [vmem:[%s3660_s1 + $0xe4] ss:$16 sps:$4 sm:$0xff]   ;;  %v2539_v3 = vld [vmem:[%s3660_s1 + $0xe0] ss:$16 sps:$4 sm:$0xff]   ;;  %s3668_s18 = smov (!%p275_p3, %s2270_s18), 3  ;;  %vm1507_vm0 = vcmask 130048  }
   0xe   : > { %v2537_v2 = vld [vmem:[%s3660_s1 + $0x2e4] ss:$16 sps:$4 sm:$0xff]   ;;  %1511 = vmatprep.subr.bf16.mxu0 %v2535_v1  ;;  %v2540_v4 = vld [vmem:[%s3660_s1 + $0x2e0] ss:$16 sps:$4 sm:$0xff]   ;;  %s2525_s16 = smul.u32 56, %s3668_s18  ;;  %vm2190_vm10 = vcmask 162816  }
   0xf   : > { %1554 = vmatprep.subr.bf16.mxu1 %v2537_v2  ;;  %v2541_v5 = vld [vmem:[%s3660_s1 + $0xc4] ss:$16 sps:$4 sm:$0xff]   ;;  %1512 = vmatpush1.bf16.msra.mxu0 %v2539_v3  ;;  %v2545_v7 = vld [vmem:[%s3660_s1 + $0xc0] ss:$16 sps:$4 sm:$0xff]   ;;  %s2273_s24 = sshll.u32 %s3668_s18, 3  ;;  %vm2206_vm12 = vcmask 7168  }
  0x10   : > { %1555 = vmatpush1.bf16.msra.mxu1 %v2540_v4  ;;  %v2543_v6 = vld [vmem:[%s3660_s1 + $0x2c4] ss:$16 sps:$4 sm:$0xff]   ;;  %1513 = vmatprep.subr.bf16.mxu0 %v2541_v5  ;;  %v2546_v8 = vld [vmem:[%s3660_s1 + $0x2c0] ss:$16 sps:$4 sm:$0xff]   ;;  %s3054_s30 = scalar_lea.vmem %s3659_s0, %s2525_s16  ;;  %s285_s27 = scalar_lea.vmem %s3666_s7, %s2273_s24 }
  0x11   : > { %1556 = vmatprep.subr.bf16.mxu1 %v2543_v6  ;;  %v2547_v9 = vld [vmem:[%s3660_s1 + $0xa4] ss:$16 sps:$4 sm:$0xff]   ;;  %v2551_v11 = vld [vmem:[%s3660_s1 + $0xa0] ss:$16 sps:$4 sm:$0xff]   ;;  %v289_v47 = vld [vmem:[%s3054_s30 + $0x8] sm:$0xff] }
  0x12   : > { %v2549_v10 = vld [vmem:[%s3660_s1 + $0x2a4] ss:$16 sps:$4 sm:$0xff]   ;;  %v2552_v12 = vld [vmem:[%s3660_s1 + $0x2a0] ss:$16 sps:$4 sm:$0xff]   ;;  %v291_v49 = vld [vmem:[%s3054_s30 + $0x18] sm:$0xff] }
  0x13   : > { %1514 = vmatpush1.bf16.msra.mxu0 %v2545_v7  ;;  %v2553_v13 = vld [vmem:[%s3660_s1 + $0x84] ss:$16 sps:$4 sm:$0xff]   ;;  %v2557_v15 = vld [vmem:[%s3660_s1 + $0x80] ss:$16 sps:$4 sm:$0xff]  }
  0x14   : > { %1557 = vmatpush1.bf16.msra.mxu1 %v2546_v8  ;;  %1515 = vmatprep.subr.bf16.mxu0 %v2547_v9  ;;  %v2555_v14 = vld [vmem:[%s3660_s1 + $0x284] ss:$16 sps:$4 sm:$0xff]   ;;  %v2558_v16 = vld [vmem:[%s3660_s1 + $0x280] ss:$16 sps:$4 sm:$0xff]   ;;  %v295_v8 = vld [vmem:[%s3054_s30 + $0x38] sm:$0xff] }
  0x15   : > { %1558 = vmatprep.subr.bf16.mxu1 %v2549_v10  ;;  %v2559_v17 = vld [vmem:[%s3660_s1 + $0x64] ss:$16 sps:$4 sm:$0xff]   ;;  %v2563_v19 = vld [vmem:[%s3660_s1 + $0x60] ss:$16 sps:$4 sm:$0xff]   ;;  %v297_v10 = vld [vmem:[%s3054_s30 + $0x48] sm:$0xff] }
  0x16   : > { %v2561_v18 = vld [vmem:[%s3660_s1 + $0x264] ss:$16 sps:$4 sm:$0xff]   ;;  %v2564_v20 = vld [vmem:[%s3660_s1 + $0x260] ss:$16 sps:$4 sm:$0xff]  }
  0x17   : > { %1516 = vmatpush1.bf16.msra.mxu0 %v2551_v11  ;;  %v2565_v21 = vld [vmem:[%s3660_s1 + $0x44] ss:$16 sps:$4 sm:$0xff]   ;;  %v2569_v23 = vld [vmem:[%s3660_s1 + $0x40] ss:$16 sps:$4 sm:$0xff]  }
  0x18   : > { %1559 = vmatpush1.bf16.msra.mxu1 %v2552_v12  ;;  %1517 = vmatprep.subr.bf16.mxu0 %v2553_v13  ;;  %v2567_v22 = vld [vmem:[%s3660_s1 + $0x244] ss:$16 sps:$4 sm:$0xff]   ;;  %v2570_v24 = vld [vmem:[%s3660_s1 + $0x240] ss:$16 sps:$4 sm:$0xff]  }
  0x19   : > { %1560 = vmatprep.subr.bf16.mxu1 %v2555_v14  ;;  %v2571_v25 = vld [vmem:[%s3660_s1 + $0x24] ss:$16 sps:$4 sm:$0xff]   ;;  %v2575_v27 = vld [vmem:[%s3660_s1 + $0x20] ss:$16 sps:$4 sm:$0xff]  }
  0x1a   : > { %v2573_v26 = vld [vmem:[%s3660_s1 + $0x224] ss:$16 sps:$4 sm:$0xff]   ;;  %v2576_v28 = vld [vmem:[%s3660_s1 + $0x220] ss:$16 sps:$4 sm:$0xff]  }
  0x1b   : > { %1518 = vmatpush1.bf16.msra.mxu0 %v2557_v15  ;;  %v2577_v29 = vld [vmem:[%s3660_s1 + $0x4] ss:$16 sps:$4 sm:$0xff]   ;;  %v2581_v31 = vld [vmem:[%s3660_s1] ss:$16 sps:$4 sm:$0xff]  }
  0x1c   : > { %1561 = vmatpush1.bf16.msra.mxu1 %v2558_v16  ;;  %1519 = vmatprep.subr.bf16.mxu0 %v2559_v17  ;;  %v2579_v30 = vld [vmem:[%s3660_s1 + $0x204] ss:$16 sps:$4 sm:$0xff]   ;;  %v2582_v32 = vld [vmem:[%s3660_s1 + $0x200] ss:$16 sps:$4 sm:$0xff]  }
  0x1d   : > { %1562 = vmatprep.subr.bf16.mxu1 %v2561_v18  ;;  %v2583_v33 = vld [vmem:[%s3660_s1 + $0x1e4] ss:$16 sps:$4 sm:$0xff]   ;;  %v2587_v35 = vld [vmem:[%s3660_s1 + $0x1e0] ss:$16 sps:$4 sm:$0xff]   ;;  %v2642_v18 = vld [vmem:[%s3660_s1 + $0xec] ss:$16 sps:$4 sm:$0xff]  }
  0x1e   : > { %v2585_v34 = vld [vmem:[%s3660_s1 + $0x3e4] ss:$16 sps:$4 sm:$0xff]   ;;  %v2588_v36 = vld [vmem:[%s3660_s1 + $0x3e0] ss:$16 sps:$4 sm:$0xff]  }
  0x1f   : > { %1520 = vmatpush1.bf16.msra.mxu0 %v2563_v19  ;;  %v2589_v37 = vld [vmem:[%s3660_s1 + $0x1c4] ss:$16 sps:$4 sm:$0xff]   ;;  %v2593_v39 = vld [vmem:[%s3660_s1 + $0x1c0] ss:$16 sps:$4 sm:$0xff]  }
  0x20   : > { %1563 = vmatpush1.bf16.msra.mxu1 %v2564_v20  ;;  %1521 = vmatprep.subr.bf16.mxu0 %v2565_v21  ;;  %v2591_v38 = vld [vmem:[%s3660_s1 + $0x3c4] ss:$16 sps:$4 sm:$0xff]   ;;  %v2594_v40 = vld [vmem:[%s3660_s1 + $0x3c0] ss:$16 sps:$4 sm:$0xff]   ;;  %v301_v21 = vld [vmem:[%s3054_s30 + $0x68] sm:$0xff] }
  0x21   : > { %1564 = vmatprep.subr.bf16.mxu1 %v2567_v22  ;;  %v2595_v41 = vld [vmem:[%s3660_s1 + $0x1a4] ss:$16 sps:$4 sm:$0xff]   ;;  %v2599_v43 = vld [vmem:[%s3660_s1 + $0x1a0] ss:$16 sps:$4 sm:$0xff]   ;;  %v2862_v22 = vmov 0  }
  0x22   : > { %v2597_v42 = vld [vmem:[%s3660_s1 + $0x3a4] ss:$16 sps:$4 sm:$0xff]   ;;  %v2600_v44 = vld [vmem:[%s3660_s1 + $0x3a0] ss:$16 sps:$4 sm:$0xff]  }
  0x23   : > { %1522 = vmatpush1.bf16.msra.mxu0 %v2569_v23  ;;  %v2601_v45 = vld [vmem:[%s3660_s1 + $0x184] ss:$16 sps:$4 sm:$0xff]   ;;  %v2605_v51 = vld [vmem:[%s3660_s1 + $0x180] ss:$16 sps:$4 sm:$0xff]  }
  0x24   : > { %1565 = vmatpush1.bf16.msra.mxu1 %v2570_v24  ;;  %1523 = vmatprep.subr.bf16.mxu0 %v2571_v25  ;;  %v2603_v46 = vld [vmem:[%s3660_s1 + $0x384] ss:$16 sps:$4 sm:$0xff]   ;;  %v2606_v52 = vld [vmem:[%s3660_s1 + $0x380] ss:$16 sps:$4 sm:$0xff]   ;;  %v2640_v25 = vld [vmem:[%s3660_s1 + $0xe8] ss:$16 sps:$4 sm:$0xff]  }
  0x25   : > { %1566 = vmatprep.subr.bf16.mxu1 %v2573_v26  ;;  %v296_v48 = vld [vmem:[%s3054_s30 + $0x40] sm:$0xff]  ;;  %v298_v50 = vld [vmem:[%s3054_s30 + $0x50] sm:$0xff] }
  0x26   : > { %v2607_v53 = vld [vmem:[%s3660_s1 + $0x164] ss:$16 sps:$4 sm:$0xff]   ;;  %v3075_v54 = vpack.c.bf16 %v296_v48, %v289_v47  ;;  %v3077_v55 = vpack.c.bf16 %v298_v50, %v291_v49  ;;  %v2611_v57 = vld [vmem:[%s3660_s1 + $0x160] ss:$16 sps:$4 sm:$0xff]   ;;  %v2670_v48 = vld [vmem:[%s3660_s1 + $0x48] ss:$16 sps:$4 sm:$0xff]  }
  0x27   : > { %1524 = vmatpush1.bf16.msra.mxu0 %v2575_v27  ;;  %v2609_v56 = vld [vmem:[%s3660_s1 + $0x364] ss:$16 sps:$4 sm:$0xff]   ;;  %v2612_v58 = vld [vmem:[%s3660_s1 + $0x360] ss:$16 sps:$4 sm:$0xff]   ;;  %v2648_v27 = vld [vmem:[%s3660_s1 + $0xcc] ss:$16 sps:$4 sm:$0xff]  }
  0x28   : > { %1567 = vmatpush1.bf16.msra.mxu1 %v2576_v28  ;;  %1525 = vmatprep.subr.bf16.mxu0 %v2577_v29  ;;  %v2613_v59 = vld [vmem:[%s3660_s1 + $0x144] ss:$16 sps:$4 sm:$0xff]   ;;  %v2617_v61 = vld [vmem:[%s3660_s1 + $0x140] ss:$16 sps:$4 sm:$0xff]   ;;  %v2646_v29 = vld [vmem:[%s3660_s1 + $0xc8] ss:$16 sps:$4 sm:$0xff]  }
  0x29   : > { %1568 = vmatprep.subr.bf16.mxu1 %v2579_v30  ;;  %1543 = vmatprep.mubr.bf16.mxu0 %v3075_v54  ;;  %v2615_v60 = vld [vmem:[%s3660_s1 + $0x344] ss:$16 sps:$4 sm:$0xff]   ;;  %v2618_v62 = vld [vmem:[%s3660_s1 + $0x340] ss:$16 sps:$4 sm:$0xff]   ;;  %v2678_v50 = vld [vmem:[%s3660_s1 + $0x2c] ss:$16 sps:$4 sm:$0xff]  }
  0x2a   : > { %1586 = vmatprep.mubr.bf16.mxu1 %v3077_v55  ;;  %v2619_v63 = vld [vmem:[%s3660_s1 + $0x124] ss:$16 sps:$4 sm:$0xff]   ;;  %v2623_v1 = vld [vmem:[%s3660_s1 + $0x120] ss:$16 sps:$4 sm:$0xff]  }
  0x2b   : > { %1526 = vmatpush1.bf16.msra.mxu0 %v2581_v31  ;;  %v2621_v0 = vld [vmem:[%s3660_s1 + $0x324] ss:$16 sps:$4 sm:$0xff]   ;;  %v2624_v2 = vld [vmem:[%s3660_s1 + $0x320] ss:$16 sps:$4 sm:$0xff]   ;;  %v2654_v31 = vld [vmem:[%s3660_s1 + $0xac] ss:$16 sps:$4 sm:$0xff]  }
  0x2c   : > { %1569 = vmatpush1.bf16.msra.mxu1 %v2582_v32  ;;  %1527 = vmatprep.subr.bf16.mxu0 %v2583_v33  ;;  %v2625_v3 = vld [vmem:[%s3660_s1 + $0x104] ss:$16 sps:$4 sm:$0xff]   ;;  %v2629_v5 = vld [vmem:[%s3660_s1 + $0x100] ss:$16 sps:$4 sm:$0xff]   ;;  %v2652_v33 = vld [vmem:[%s3660_s1 + $0xa8] ss:$16 sps:$4 sm:$0xff]  }
  0x2d   : > { %1570 = vmatprep.subr.bf16.mxu1 %v2585_v34  ;;  %v2627_v4 = vld [vmem:[%s3660_s1 + $0x304] ss:$16 sps:$4 sm:$0xff]   ;;  %v2630_v6 = vld [vmem:[%s3660_s1 + $0x300] ss:$16 sps:$4 sm:$0xff]  }
  0x2e   : > { %v288_v7 = vld [vmem:[%s3054_s30] sm:$0xff]  ;;  %v290_v9 = vld [vmem:[%s3054_s30 + $0x10] sm:$0xff] }
  0x2f   : > { %1528 = vmatpush2.bf16.msra.mxu0 %v2587_v35  ;;  %v2633_v11 = vld [vmem:[%s3660_s1 + $0x4e4] ss:$16 sps:$4 sm:$0xff]   ;;  %v3136_v13 = vpack.c.bf16 %v295_v8, %v288_v7  ;;  %v3138_v14 = vpack.c.bf16 %v297_v10, %v290_v9  ;;  %v2631_v15 = vld [vmem:[%s3660_s1 + $0x4e0] ss:$16 sps:$4 sm:$0xff]   ;;  %v2660_v35 = vld [vmem:[%s3660_s1 + $0x8c] ss:$16 sps:$4 sm:$0xff]  }
  0x30   : > { %1571 = vmatpush2.bf16.msra.mxu1 %v2588_v36  ;;  %1529 = vmatprep.subr.bf16.mxu0 %v2589_v37  ;;  %v2636_v12 = vld [vmem:[%s3660_s1 + $0x604] ss:$16 sps:$4 sm:$0xff]   ;;  %v2634_v16 = vld [vmem:[%s3660_s1 + $0x600] ss:$16 sps:$4 sm:$0xff]   ;;  %v2658_v37 = vld [vmem:[%s3660_s1 + $0x88] ss:$16 sps:$4 sm:$0xff]  }
  0x31   : > { %1572 = vmatprep.subr.bf16.mxu1 %v2591_v38  ;;  %v2639_v17 = vld [vmem:[%s3660_s1 + $0x4c4] ss:$16 sps:$4 sm:$0xff]   ;;  %v2637_v19 = vld [vmem:[%s3660_s1 + $0x4c0] ss:$16 sps:$4 sm:$0xff]   ;;  %v2708_v7 = vld [vmem:[%s3660_s1 + $0x18c] ss:$16 sps:$4 sm:$0xff]  }
  0x32   : > { %v294_v20 = vld [vmem:[%s3054_s30 + $0x30] sm:$0xff]  ;;  %v2706_v9 = vld [vmem:[%s3660_s1 + $0x188] ss:$16 sps:$4 sm:$0xff]  }
  0x33   : > { %1530 = vmatpush2.bf16.msra.mxu0 %v2593_v39  ;;  %v2645_v23 = vld [vmem:[%s3660_s1 + $0x4a4] ss:$16 sps:$4 sm:$0xff]   ;;  %v3163_v24 = vpack.c.bf16 %v301_v21, %v294_v20  ;;  %v2643_v26 = vld [vmem:[%s3660_s1 + $0x4a0] ss:$16 sps:$4 sm:$0xff]   ;;  %v2666_v39 = vld [vmem:[%s3660_s1 + $0x6c] ss:$16 sps:$4 sm:$0xff]  }
  0x34   : > { %1573 = vmatpush2.bf16.msra.mxu1 %v2594_v40  ;;  %1531 = vmatprep.subr.bf16.mxu0 %v2595_v41  ;;  %v2651_v28 = vld [vmem:[%s3660_s1 + $0x484] ss:$16 sps:$4 sm:$0xff]   ;;  %v2649_v30 = vld [vmem:[%s3660_s1 + $0x480] ss:$16 sps:$4 sm:$0xff]   ;;  %v2664_v41 = vld [vmem:[%s3660_s1 + $0x68] ss:$16 sps:$4 sm:$0xff]  }
  0x35   : > { %1574 = vmatprep.subr.bf16.mxu1 %v2597_v42  ;;  %v2657_v32 = vld [vmem:[%s3660_s1 + $0x464] ss:$16 sps:$4 sm:$0xff]   ;;  %v2655_v34 = vld [vmem:[%s3660_s1 + $0x460] ss:$16 sps:$4 sm:$0xff]   ;;  %v293_v42 = vld [vmem:[%s3054_s30 + $0x28] sm:$0xff] }
  0x36   : > { %v2663_v36 = vld [vmem:[%s3660_s1 + $0x444] ss:$16 sps:$4 sm:$0xff]   ;;  %v2661_v38 = vld [vmem:[%s3660_s1 + $0x440] ss:$16 sps:$4 sm:$0xff]  }
  0x37   : > { %1532 = vmatpush2.bf16.msra.mxu0 %v2599_v43  ;;  %v2669_v40 = vld [vmem:[%s3660_s1 + $0x424] ss:$16 sps:$4 sm:$0xff]   ;;  %v2673_v49 = vld [vmem:[%s3660_s1 + $0x400] ss:$16 sps:$4 sm:$0xff]  }
  0x38   : > { %1575 = vmatpush2.bf16.msra.mxu1 %v2600_v44  ;;  %1533 = vmatprep.subr.bf16.mxu0 %v2601_v45  ;;  %v300_v43 = vld [vmem:[%s3054_s30 + $0x60] sm:$0xff] }
  0x39   : > { %1576 = vmatprep.subr.bf16.mxu1 %v2603_v46  ;;  %v2667_v44 = vld [vmem:[%s3660_s1 + $0x420] ss:$16 sps:$4 sm:$0xff]   ;;  %v3224_v45 = vpack.c.bf16 %v300_v43, %v293_v42  ;;  %v2672_v46 = vld [vmem:[%s3660_s1 + $0x4c] ss:$16 sps:$4 sm:$0xff]   ;;  %v2675_v47 = vld [vmem:[%s3660_s1 + $0x404] ss:$16 sps:$4 sm:$0xff]  }
  0x3a   : > { %v2711_v8 = vld [vmem:[%s3660_s1 + $0x544] ss:$16 sps:$4 sm:$0xff]   ;;  %v2709_v10 = vld [vmem:[%s3660_s1 + $0x540] ss:$16 sps:$4 sm:$0xff]   ;;  %v2753_v42 = vld [vmem:[%s3660_s1 + $0x26c] ss:$16 sps:$4 sm:$0xff]  }
  0x3b   : > { %1534 = vmatpush2.bf16.msra.mxu0 %v2605_v51  ;;  %v2681_v51 = vld [vmem:[%s3660_s1 + $0x5e4] ss:$16 sps:$4 sm:$0xff]   ;;  %v2721_v20 = vld [vmem:[%s3660_s1 + $0x500] ss:$16 sps:$4 sm:$0xff]   ;;  %v2748_v43 = vld [vmem:[%s3660_s1 + $0x4a8] ss:$16 sps:$4 sm:$0xff]  }
  0x3c   : > { %1577 = vmatpush2.bf16.msra.mxu1 %v2606_v52  ;;  %1535 = vmatprep.subr.bf16.mxu0 %v2607_v53  ;;  %v2676_v52 = vld [vmem:[%s3660_s1 + $0x28] ss:$16 sps:$4 sm:$0xff]   ;;  %v2679_v53 = vld [vmem:[%s3660_s1 + $0x5e0] ss:$16 sps:$4 sm:$0xff]  }
  0x3d   : > { %1578 = vmatprep.subr.bf16.mxu1 %v2609_v56  ;;  %v2687_v56 = vld [vmem:[%s3660_s1 + $0x5c4] ss:$16 sps:$4 sm:$0xff]  }
  0x3e   : > { %v292_v21 = vld [vmem:[%s3054_s30 + $0x20] sm:$0xff] }
  0x3f   : > { %1536 = vmatpush2.bf16.msra.mxu0 %v2611_v57  ;;  %v2682_v57 = vld [vmem:[%s3660_s1 + $0x8] ss:$16 sps:$4 sm:$0xff]  }
  0x40   : > { %1579 = vmatpush2.bf16.msra.mxu1 %v2612_v58  ;;  %1537 = vmatprep.subr.bf16.mxu0 %v2613_v59  ;;  %v2685_v58 = vld [vmem:[%s3660_s1 + $0x5c0] ss:$16 sps:$4 sm:$0xff]   ;;  %v2690_v59 = vld [vmem:[%s3660_s1 + $0x1ec] ss:$16 sps:$4 sm:$0xff]  }
  0x41   : > { %1580 = vmatprep.subr.bf16.mxu1 %v2615_v60  ;;  %v2693_v60 = vld [vmem:[%s3660_s1 + $0x5a4] ss:$16 sps:$4 sm:$0xff]  }
  0x43   : > { %1538 = vmatpush2.bf16.msra.mxu0 %v2617_v61  ;;  %v2688_v61 = vld [vmem:[%s3660_s1 + $0x1e8] ss:$16 sps:$4 sm:$0xff]  }
  0x44   : > { %1581 = vmatpush2.bf16.msra.mxu1 %v2618_v62  ;;  %1539 = vmatprep.subr.bf16.mxu0 %v2619_v63  ;;  %v2691_v62 = vld [vmem:[%s3660_s1 + $0x5a0] ss:$16 sps:$4 sm:$0xff]   ;;  %v2696_v63 = vld [vmem:[%s3660_s1 + $0x1cc] ss:$16 sps:$4 sm:$0xff]  }
  0x45   : > { %1582 = vmatprep.subr.bf16.mxu1 %v2621_v0  ;;  %v2699_v0 = vld [vmem:[%s3660_s1 + $0x584] ss:$16 sps:$4 sm:$0xff]  }
  0x47   : > { %1540 = vmatpush2.bf16.msra.mxu0 %v2623_v1  ;;  %v2694_v1 = vld [vmem:[%s3660_s1 + $0x1c8] ss:$16 sps:$4 sm:$0xff]  }
  0x48   : > { %1583 = vmatpush2.bf16.msra.mxu1 %v2624_v2  ;;  %1541 = vmatprep.subr.bf16.mxu0 %v2625_v3  ;;  %v2697_v2 = vld [vmem:[%s3660_s1 + $0x580] ss:$16 sps:$4 sm:$0xff]   ;;  %v2702_v3 = vld [vmem:[%s3660_s1 + $0x1ac] ss:$16 sps:$4 sm:$0xff]  }
  0x49   : > { %1584 = vmatprep.subr.bf16.mxu1 %v2627_v4  ;;  %v2705_v4 = vld [vmem:[%s3660_s1 + $0x564] ss:$16 sps:$4 sm:$0xff]  }
  0x4b   : > { %1542 = vmatpush2.bf16.msra.mxu0 %v2629_v5  ;;  %v2700_v5 = vld [vmem:[%s3660_s1 + $0x1a8] ss:$16 sps:$4 sm:$0xff]  }
  0x4c   : > { %1585 = vmatpush2.bf16.msra.mxu1 %v2630_v6  ;;  %1597 = vmatprep.subr.bf16.mxu0 %v2633_v11  ;;  %v2703_v6 = vld [vmem:[%s3660_s1 + $0x560] ss:$16 sps:$4 sm:$0xff]   ;;  %v2714_v11 = vld [vmem:[%s3660_s1 + $0x16c] ss:$16 sps:$4 sm:$0xff]  }
  0x4d   : > { %1654 = vmatprep.subr.bf16.mxu1 %v2636_v12  ;;  %v2717_v12 = vld [vmem:[%s3660_s1 + $0x524] ss:$16 sps:$4 sm:$0xff]  }
  0x4e   : > { %1544 = vmatmul.mubr.bf16.vlgmr.msra.gmra.mxu0 %v3136_v13 }
  0x4f   : > { %1587 = vmatmul.mubr.bf16.vlgmr.msra.gmra.mxu1 %v3138_v14  ;;  %1598 = vmatpush1.bf16.msra.mxu0 %v2631_v15  ;;  %v2712_v15 = vld [vmem:[%s3660_s1 + $0x168] ss:$16 sps:$4 sm:$0xff]  }
  0x50   : > { %1655 = vmatpush1.bf16.msra.mxu1 %v2634_v16  ;;  %1599 = vmatprep.subr.bf16.mxu0 %v2639_v17  ;;  %v2715_v16 = vld [vmem:[%s3660_s1 + $0x520] ss:$16 sps:$4 sm:$0xff]   ;;  %v2720_v17 = vld [vmem:[%s3660_s1 + $0x14c] ss:$16 sps:$4 sm:$0xff]  }
  0x51   : > { %1672 = vmatprep.mubr.bf16.mxu1 %v2862_v22  ;;  %1683 = vmatprep.subr.bf16.mxu1 %v2642_v18  ;;  %v2723_v18 = vld [vmem:[%s3660_s1 + $0x504] ss:$16 sps:$4 sm:$0xff]  }
  0x52   : > { %1629 = vmatprep.mubr.bf16.mxu0 %v3224_v45 }
  0x53   : > { %1600 = vmatpush1.bf16.msra.mxu0 %v2637_v19  ;;  %v2718_v19 = vld [vmem:[%s3660_s1 + $0x148] ss:$16 sps:$4 sm:$0xff]  }
  0x54   : > { %1601 = vmatprep.subr.bf16.mxu0 %v2645_v23  ;;  %v299_v23 = vld [vmem:[%s3054_s30 + $0x58] sm:$0xff] }
  0x57   : > { %2470 = vmatmul.mubr.msk.bf16.vlgmr.msra.gmra.mxu1 %vm1507_vm0, %v3163_v24  ;;  %1602 = vmatpush1.bf16.msra.mxu0 %v2643_v26  ;;  %v2729_v26 = vld [vmem:[%s3660_s1 + $0x2ec] ss:$16 sps:$4 sm:$0xff]  }
  0x58   : > { %1684 = vmatpush1.bf16.msra.mxu1 %v2640_v25  ;;  %1603 = vmatprep.subr.bf16.mxu0 %v2651_v28  ;;  %v2726_v25 = vld [vmem:[%s3660_s1 + $0x12c] ss:$16 sps:$4 sm:$0xff]   ;;  %v2724_v28 = vld [vmem:[%s3660_s1 + $0x128] ss:$16 sps:$4 sm:$0xff]  }
  0x59   : > { %1685 = vmatprep.subr.bf16.mxu1 %v2648_v27  ;;  %1715 = vmatprep.mubr.bf16.mxu1 %v3075_v54  ;;  %v2684_v54 = vld [vmem:[%s3660_s1 + $0xc] ss:$16 sps:$4 sm:$0xff]   ;;  %v3343_v27 = vpack.c.bf16 %v299_v23, %v292_v21  ;;  %v2808_v21 = vld [vmem:[%s3660_s1 + $0x568] ss:$16 sps:$4 sm:$0xff]  }
  0x5a   : > { %v2811_v23 = vld [vmem:[%s3660_s1 + $0x328] ss:$16 sps:$4 sm:$0xff]  }
  0x5b   : > { %1604 = vmatpush1.bf16.msra.mxu0 %v2649_v30  ;;  %v2732_v30 = vld [vmem:[%s3660_s1 + $0x10c] ss:$16 sps:$4 sm:$0xff]  }
  0x5c   : > { %1686 = vmatpush1.bf16.msra.mxu1 %v2646_v29  ;;  %1605 = vmatprep.subr.bf16.mxu0 %v2657_v32  ;;  %v2727_v29 = vld [vmem:[%s3660_s1 + $0x2e8] ss:$16 sps:$4 sm:$0xff]  }
  0x5d   : > { %1687 = vmatprep.subr.bf16.mxu1 %v2654_v31  ;;  %v2735_v31 = vld [vmem:[%s3660_s1 + $0x2cc] ss:$16 sps:$4 sm:$0xff]   ;;  %v2730_v32 = vld [vmem:[%s3660_s1 + $0x108] ss:$16 sps:$4 sm:$0xff]  }
  0x5f   : > { %1606 = vmatpush1.bf16.msra.mxu0 %v2655_v34  ;;  %v2738_v34 = vld [vmem:[%s3660_s1 + $0x4ec] ss:$16 sps:$4 sm:$0xff]  }
  0x60   : > { %1688 = vmatpush1.bf16.msra.mxu1 %v2652_v33  ;;  %1607 = vmatprep.subr.bf16.mxu0 %v2663_v36  ;;  %v2733_v33 = vld [vmem:[%s3660_s1 + $0x2c8] ss:$16 sps:$4 sm:$0xff]  }
  0x61   : > { %1689 = vmatprep.subr.bf16.mxu1 %v2660_v35  ;;  %v2741_v35 = vld [vmem:[%s3660_s1 + $0x2ac] ss:$16 sps:$4 sm:$0xff]   ;;  %v2736_v36 = vld [vmem:[%s3660_s1 + $0x4e8] ss:$16 sps:$4 sm:$0xff]  }
  0x63   : > { %1608 = vmatpush1.bf16.msra.mxu0 %v2661_v38  ;;  %v2744_v38 = vld [vmem:[%s3660_s1 + $0x4cc] ss:$16 sps:$4 sm:$0xff]  }
  0x64   : > { %1690 = vmatpush1.bf16.msra.mxu1 %v2658_v37  ;;  %1609 = vmatprep.subr.bf16.mxu0 %v2669_v40  ;;  %v2739_v37 = vld [vmem:[%s3660_s1 + $0x2a8] ss:$16 sps:$4 sm:$0xff]  }
  0x65   : > { %1691 = vmatprep.subr.bf16.mxu1 %v2666_v39  ;;  %v2747_v39 = vld [vmem:[%s3660_s1 + $0x28c] ss:$16 sps:$4 sm:$0xff]   ;;  %v2742_v40 = vld [vmem:[%s3660_s1 + $0x4c8] ss:$16 sps:$4 sm:$0xff]  }
  0x67   : > { %1610 = vmatpush1.bf16.msra.mxu0 %v2667_v44  ;;  %v2756_v44 = vld [vmem:[%s3660_s1 + $0x48c] ss:$16 sps:$4 sm:$0xff]  }
  0x68   : > { %1692 = vmatpush1.bf16.msra.mxu1 %v2664_v41  ;;  %1611 = vmatprep.subr.bf16.mxu0 %v2675_v47  ;;  %v2750_v41 = vld [vmem:[%s3660_s1 + $0x4ac] ss:$16 sps:$4 sm:$0xff]   ;;  %v2754_v47 = vld [vmem:[%s3660_s1 + $0x488] ss:$16 sps:$4 sm:$0xff]  }
  0x69   : > { %1693 = vmatprep.subr.bf16.mxu1 %v2672_v46  ;;  %v2759_v46 = vld [vmem:[%s3660_s1 + $0x24c] ss:$16 sps:$4 sm:$0xff]  }
  0x6b   : > { %1612 = vmatpush1.bf16.msra.mxu0 %v2673_v49  ;;  %v2765_v49 = vld [vmem:[%s3660_s1 + $0x22c] ss:$16 sps:$4 sm:$0xff]  }
  0x6c   : > { %1694 = vmatpush1.bf16.msra.mxu1 %v2670_v48  ;;  %1613 = vmatprep.subr.bf16.mxu0 %v2681_v51  ;;  %v2762_v48 = vld [vmem:[%s3660_s1 + $0x46c] ss:$16 sps:$4 sm:$0xff]   ;;  %v2763_v51 = vld [vmem:[%s3660_s1 + $0x228] ss:$16 sps:$4 sm:$0xff]  }
  0x6d   : > { %1695 = vmatprep.subr.bf16.mxu1 %v2678_v50  ;;  %v2760_v50 = vld [vmem:[%s3660_s1 + $0x468] ss:$16 sps:$4 sm:$0xff]  }
  0x6f   : > { %1614 = vmatpush2.bf16.msra.mxu0 %v2679_v53  ;;  %v2771_v53 = vld [vmem:[%s3660_s1 + $0x20c] ss:$16 sps:$4 sm:$0xff]  }
  0x70   : > { %1696 = vmatpush1.bf16.msra.mxu1 %v2676_v52  ;;  %1615 = vmatprep.subr.bf16.mxu0 %v2687_v56  ;;  %v2768_v52 = vld [vmem:[%s3660_s1 + $0x44c] ss:$16 sps:$4 sm:$0xff]   ;;  %v2769_v56 = vld [vmem:[%s3660_s1 + $0x208] ss:$16 sps:$4 sm:$0xff]  }
  0x71   : > { %1697 = vmatprep.subr.bf16.mxu1 %v2684_v54  ;;  %v2766_v54 = vld [vmem:[%s3660_s1 + $0x448] ss:$16 sps:$4 sm:$0xff]  }
  0x73   : > { %1616 = vmatpush2.bf16.msra.mxu0 %v2685_v58  ;;  %v2777_v58 = vld [vmem:[%s3660_s1 + $0x3ec] ss:$16 sps:$4 sm:$0xff]  }
  0x74   : > { %1698 = vmatpush1.bf16.msra.mxu1 %v2682_v57  ;;  %1617 = vmatprep.subr.bf16.mxu0 %v2693_v60  ;;  %v2774_v57 = vld [vmem:[%s3660_s1 + $0x42c] ss:$16 sps:$4 sm:$0xff]   ;;  %v2775_v60 = vld [vmem:[%s3660_s1 + $0x3e8] ss:$16 sps:$4 sm:$0xff]  }
  0x75   : > { %1699 = vmatprep.subr.bf16.mxu1 %v2690_v59  ;;  %v2772_v59 = vld [vmem:[%s3660_s1 + $0x428] ss:$16 sps:$4 sm:$0xff]  }
  0x77   : > { %1618 = vmatpush2.bf16.msra.mxu0 %v2691_v62  ;;  %v2783_v62 = vld [vmem:[%s3660_s1 + $0x3cc] ss:$16 sps:$4 sm:$0xff]  }
  0x78   : > { %1700 = vmatpush2.bf16.msra.mxu1 %v2688_v61  ;;  %1619 = vmatprep.subr.bf16.mxu0 %v2699_v0  ;;  %v2780_v61 = vld [vmem:[%s3660_s1 + $0x40c] ss:$16 sps:$4 sm:$0xff]   ;;  %v2781_v0 = vld [vmem:[%s3660_s1 + $0x3c8] ss:$16 sps:$4 sm:$0xff]  }
  0x79   : > { %1701 = vmatprep.subr.bf16.mxu1 %v2696_v63  ;;  %v2778_v63 = vld [vmem:[%s3660_s1 + $0x408] ss:$16 sps:$4 sm:$0xff]  }
  0x7b   : > { %1620 = vmatpush2.bf16.msra.mxu0 %v2697_v2  ;;  %v2789_v2 = vld [vmem:[%s3660_s1 + $0x3ac] ss:$16 sps:$4 sm:$0xff]  }
  0x7c   : > { %1702 = vmatpush2.bf16.msra.mxu1 %v2694_v1  ;;  %1621 = vmatprep.subr.bf16.mxu0 %v2705_v4  ;;  %v2786_v1 = vld [vmem:[%s3660_s1 + $0x5ec] ss:$16 sps:$4 sm:$0xff]   ;;  %v2787_v4 = vld [vmem:[%s3660_s1 + $0x3a8] ss:$16 sps:$4 sm:$0xff]  }
  0x7d   : > { %1703 = vmatprep.subr.bf16.mxu1 %v2702_v3  ;;  %v2784_v3 = vld [vmem:[%s3660_s1 + $0x5e8] ss:$16 sps:$4 sm:$0xff]  }
  0x7f   : > { %1622 = vmatpush2.bf16.msra.mxu0 %v2703_v6  ;;  %v2795_v6 = vld [vmem:[%s3660_s1 + $0x38c] ss:$16 sps:$4 sm:$0xff]  }
  0x80   : > { %1704 = vmatpush2.bf16.msra.mxu1 %v2700_v5  ;;  %1623 = vmatprep.subr.bf16.mxu0 %v2711_v8  ;;  %v2792_v5 = vld [vmem:[%s3660_s1 + $0x5cc] ss:$16 sps:$4 sm:$0xff]   ;;  %v2793_v8 = vld [vmem:[%s3660_s1 + $0x388] ss:$16 sps:$4 sm:$0xff]  }
  0x81   : > { %1705 = vmatprep.subr.bf16.mxu1 %v2708_v7  ;;  %v2790_v7 = vld [vmem:[%s3660_s1 + $0x5c8] ss:$16 sps:$4 sm:$0xff]  }
  0x83   : > { %1624 = vmatpush2.bf16.msra.mxu0 %v2709_v10  ;;  %v2801_v10 = vld [vmem:[%s3660_s1 + $0x36c] ss:$16 sps:$4 sm:$0xff]  }
  0x84   : > { %1706 = vmatpush2.bf16.msra.mxu1 %v2706_v9  ;;  %1625 = vmatprep.subr.bf16.mxu0 %v2717_v12  ;;  %v2798_v9 = vld [vmem:[%s3660_s1 + $0x5ac] ss:$16 sps:$4 sm:$0xff]   ;;  %v2799_v12 = vld [vmem:[%s3660_s1 + $0x368] ss:$16 sps:$4 sm:$0xff]  }
  0x85   : > { %1707 = vmatprep.subr.bf16.mxu1 %v2714_v11  ;;  %v2796_v11 = vld [vmem:[%s3660_s1 + $0x5a8] ss:$16 sps:$4 sm:$0xff]  }
  0x87   : > { %1626 = vmatpush2.bf16.msra.mxu0 %v2715_v16  ;;  %v2807_v16 = vld [vmem:[%s3660_s1 + $0x34c] ss:$16 sps:$4 sm:$0xff]  }
  0x88   : > { %1708 = vmatpush2.bf16.msra.mxu1 %v2712_v15  ;;  %1627 = vmatprep.subr.bf16.mxu0 %v2723_v18  ;;  %v2804_v15 = vld [vmem:[%s3660_s1 + $0x58c] ss:$16 sps:$4 sm:$0xff]   ;;  %v2805_v18 = vld [vmem:[%s3660_s1 + $0x348] ss:$16 sps:$4 sm:$0xff]  }
  0x89   : > { %1709 = vmatprep.subr.bf16.mxu1 %v2720_v17  ;;  %v2802_v17 = vld [vmem:[%s3660_s1 + $0x588] ss:$16 sps:$4 sm:$0xff]  }
  0x8b   : > { %1628 = vmatpush2.bf16.msra.mxu0 %v2721_v20  ;;  %v2813_v20 = vld [vmem:[%s3660_s1 + $0x32c] ss:$16 sps:$4 sm:$0xff]  }
  0x8c   : > { %1710 = vmatpush2.bf16.msra.mxu1 %v2718_v19  ;;  %1726 = vmatprep.subr.bf16.mxu0 %v2729_v26  ;;  %v2810_v19 = vld [vmem:[%s3660_s1 + $0x56c] ss:$16 sps:$4 sm:$0xff]  }
  0x8d   : > { %1711 = vmatprep.subr.bf16.mxu1 %v2726_v25  ;;  %v2816_v25 = vld [vmem:[%s3660_s1 + $0x54c] ss:$16 sps:$4 sm:$0xff]  }
  0x8e   : > { %1630 = vmatmul.mubr.bf16.vlgmr.msra.gmra.mxu0 %v3343_v27  ;;  %v2819_v26 = vld [vmem:[%s3660_s1 + $0x30c] ss:$16 sps:$4 sm:$0xff]  }
  0x8f   : > { %1727 = vmatpush1.bf16.msra.mxu0 %v2727_v29  ;;  %1758 = vmatprep.mubr.bf16.mxu0 %v3077_v55  ;;  %v2745_v55 = vld [vmem:[%s3660_s1 + $0x288] ss:$16 sps:$4 sm:$0xff]  }
  0x90   : > { %1712 = vmatpush2.bf16.msra.mxu1 %v2724_v28  ;;  %1728 = vmatprep.subr.bf16.mxu0 %v2735_v31  ;;  %v2814_v28 = vld [vmem:[%s3660_s1 + $0x548] ss:$16 sps:$4 sm:$0xff]   ;;  %v2825_v31 = vld [vmem:[%s3660_s1 + $0x60c] ss:$16 sps:$4 sm:$0xff]  }
  0x91   : > { %1713 = vmatprep.subr.bf16.mxu1 %v2732_v30  ;;  %v2817_v29 = vld [vmem:[%s3660_s1 + $0x308] ss:$16 sps:$4 sm:$0xff]   ;;  %v2822_v30 = vld [vmem:[%s3660_s1 + $0x52c] ss:$16 sps:$4 sm:$0xff]  }
  0x93   : > { %1729 = vmatpush1.bf16.msra.mxu0 %v2733_v33  ;;  %v2823_v33 = vld [vmem:[%s3660_s1 + $0x608] ss:$16 sps:$4 sm:$0xff]  }
  0x94   : > { %1714 = vmatpush2.bf16.msra.mxu1 %v2730_v32  ;;  %1730 = vmatprep.subr.bf16.mxu0 %v2741_v35  ;;  %v2820_v32 = vld [vmem:[%s3660_s1 + $0x528] ss:$16 sps:$4 sm:$0xff]  }
  0x95   : > { %1769 = vmatprep.subr.bf16.mxu1 %v2738_v34  ;;  %v2828_v34 = vld [vmem:[%s3660_s1 + $0x50c] ss:$16 sps:$4 sm:$0xff]  }
  0x96   : > { %v2829_v35 = vld [vmem:[%s3662_s3 + $0x78] sm:$0xff]  }
  0x97   : > { %1716 = vmatmul.mubr.bf16.vlgmr.msra.gmra.mxu1 %v3136_v13  ;;  %1731 = vmatpush1.bf16.msra.mxu0 %v2739_v37  ;;  %v2751_v13 = vld [vmem:[%s3660_s1 + $0x268] ss:$16 sps:$4 sm:$0xff]  }
  0x98   : > { %1770 = vmatpush1.bf16.msra.mxu1 %v2736_v36  ;;  %1732 = vmatprep.subr.bf16.mxu0 %v2747_v39  ;;  %v2826_v36 = vld [vmem:[%s3660_s1 + $0x508] ss:$16 sps:$4 sm:$0xff]  }
  0x99   : > { %1771 = vmatprep.subr.bf16.mxu1 %v2744_v38  ;;  %1801 = vmatprep.mubr.bf16.mxu1 %v3224_v45  ;;  %v2757_v45 = vld [vmem:[%s3660_s1 + $0x248] ss:$16 sps:$4 sm:$0xff]   ;;  %v2831_v38 = vld [vmem:[%s3662_s3 + $0x70] sm:$0xff]  }
  0x9a   : > { %v2830_v37 = vld [vmem:[%s3662_s3 + $0x38] sm:$0xff]   ;;  %v2833_v39 = vld [vmem:[%s3662_s3 + $0x68] sm:$0xff]  }
  0x9b   : > { %1733 = vmatpush1.bf16.msra.mxu0 %v2745_v55  ;;  %v2837_v55 = vld [vmem:[%s3662_s3 + $0x58] sm:$0xff]  }
  0x9c   : > { %1772 = vmatpush1.bf16.msra.mxu1 %v2742_v40  ;;  %1734 = vmatprep.subr.bf16.mxu0 %v2753_v42  ;;  %v2834_v40 = vld [vmem:[%s3662_s3 + $0x28] sm:$0xff]   ;;  %v2846_v42 = vld [vmem:[%s3662_s3 + $0xb0] sm:$0xff]  }
  0x9d   : > { %1773 = vmatprep.subr.bf16.mxu1 %v2750_v41  ;;  %v2845_v41 = vld [vmem:[%s3662_s3 + $0xb8] sm:$0xff]  }
  0x9f   : > { %1735 = vmatpush1.bf16.msra.mxu0 %v2751_v13  ;;  %v2839_v13 = vld [vmem:[%s3662_s3 + $0x50] sm:$0xff]  }
  0xa0   : > { %1774 = vmatpush1.bf16.msra.mxu1 %v2748_v43  ;;  %1736 = vmatprep.subr.bf16.mxu0 %v2759_v46  ;;  %v2838_v43 = vld [vmem:[%s3662_s3 + $0x18] sm:$0xff]   ;;  %v2840_v46 = vld [vmem:[%s3662_s3 + $0x10] sm:$0xff]  }
  0xa1   : > { %1775 = vmatprep.subr.bf16.mxu1 %v2756_v44  ;;  %v2847_v44 = vld [vmem:[%s3662_s3 + $0xa8] sm:$0xff]  }
  0xa3   : > { %1737 = vmatpush1.bf16.msra.mxu0 %v2757_v45  ;;  %v2842_v45 = vld [vmem:[%s3662_s3 + $0x8] sm:$0xff]  }
  0xa4   : > { %1776 = vmatpush1.bf16.msra.mxu1 %v2754_v47  ;;  %1738 = vmatprep.subr.bf16.mxu0 %v2765_v49  ;;  %v2841_v47 = vld [vmem:[%s3662_s3 + $0x48] sm:$0xff]   ;;  %v2844_v49 = vld [vmem:[%s3662_s3] sm:$0xff]  }
  0xa5   : > { %1777 = vmatprep.subr.bf16.mxu1 %v2762_v48  ;;  %v2843_v48 = vld [vmem:[%s3662_s3 + $0x40] sm:$0xff]  }
  0xa7   : > { %1739 = vmatpush1.bf16.msra.mxu0 %v2763_v51  ;;  %v2849_v51 = vld [vmem:[%s3662_s3 + $0x98] sm:$0xff]  }
  0xa8   : > { %1778 = vmatpush1.bf16.msra.mxu1 %v2760_v50  ;;  %1740 = vmatprep.subr.bf16.mxu0 %v2771_v53  ;;  %v2848_v50 = vld [vmem:[%s3662_s3 + $0xa0] sm:$0xff]   ;;  %v2851_v53 = vld [vmem:[%s3662_s3 + $0x88] sm:$0xff]  }
  0xa9   : > { %1779 = vmatprep.subr.bf16.mxu1 %v2768_v52  ;;  %v2850_v52 = vld [vmem:[%s3662_s3 + $0x90] sm:$0xff]  }
  0xab   : > { %1741 = vmatpush1.bf16.msra.mxu0 %v2769_v56  ;;  %v2853_v56 = vld [vmem:[%s3662_s3 + $0xc0] sm:$0xff]  }
  0xac   : > { %1780 = vmatpush1.bf16.msra.mxu1 %v2766_v54  ;;  %1742 = vmatprep.subr.bf16.mxu0 %v2777_v58  ;;  %v2852_v54 = vld [vmem:[%s3662_s3 + $0x80] sm:$0xff]  }
  0xad   : > { %1781 = vmatprep.subr.bf16.mxu1 %v2774_v57  ;;  %v507_v57 = vlaneseq }
  0xaf   : > { %1743 = vmatpush2.bf16.msra.mxu0 %v2775_v60 }
  0xb0   : > { %1782 = vmatpush1.bf16.msra.mxu1 %v2772_v59  ;;  %1744 = vmatprep.subr.bf16.mxu0 %v2783_v62  ;;  %v508_v59 = vshrl.u32 %v507_v57, 7 }
  0xb1   : > { %1783 = vmatprep.subr.bf16.mxu1 %v2780_v61 }
  0xb2   : > { %v509_v62 = vsub.s32 0, %v508_v59 }
  0xb3   : > { %1745 = vmatpush2.bf16.msra.mxu0 %v2781_v0 }
  0xb4   : > { %1784 = vmatpush1.bf16.msra.mxu1 %v2778_v63  ;;  %1746 = vmatprep.subr.bf16.mxu0 %v2789_v2  ;;  %v513_v63 = vsub.s32 1, %v508_v59 }
  0xb5   : > { %1785 = vmatprep.subr.bf16.mxu1 %v2786_v1  ;;  %v505_v1 = vld [vmem:[%s3661_s2] sm:$0xf] }
  0xb7   : > { %1747 = vmatpush2.bf16.msra.mxu0 %v2787_v4 }
  0xb8   : > { %1786 = vmatpush2.bf16.msra.mxu1 %v2784_v3  ;;  %1748 = vmatprep.subr.bf16.mxu0 %v2795_v6  ;;  %v510_v3 = vrot.slane %v505_v1, %v509_v62 }
  0xb9   : > { %1787 = vmatprep.subr.bf16.mxu1 %v2792_v5 }
  0xbb   : > { %1749 = vmatpush2.bf16.msra.mxu0 %v2793_v8 }
  0xbc   : > { %1788 = vmatpush2.bf16.msra.mxu1 %v2790_v7  ;;  %1750 = vmatprep.subr.bf16.mxu0 %v2801_v10 }
  0xbd   : > { %1789 = vmatprep.subr.bf16.mxu1 %v2798_v9 }
  0xbf   : > { %1751 = vmatpush2.bf16.msra.mxu0 %v2799_v12 }
  0xc0   : > { %1790 = vmatpush2.bf16.msra.mxu1 %v2796_v11  ;;  %1752 = vmatprep.subr.bf16.mxu0 %v2807_v16 }
  0xc1   : > { %1791 = vmatprep.subr.bf16.mxu1 %v2804_v15 }
  0xc3   : > { %1753 = vmatpush2.bf16.msra.mxu0 %v2805_v18 }
  0xc4   : > { %1792 = vmatpush2.bf16.msra.mxu1 %v2802_v17  ;;  %1754 = vmatprep.subr.bf16.mxu0 %v2813_v20 }
  0xc5   : > { %1793 = vmatprep.subr.bf16.mxu1 %v2810_v19 }
  0xc7   : > { %1755 = vmatpush2.bf16.msra.mxu0 %v2811_v23 }
  0xc8   : > { %1794 = vmatpush2.bf16.msra.mxu1 %v2808_v21  ;;  %1756 = vmatprep.subr.bf16.mxu0 %v2819_v26 }
  0xc9   : > { %1795 = vmatprep.subr.bf16.mxu1 %v2816_v25 }
  0xcb   : > { %1757 = vmatpush2.bf16.msra.mxu0 %v2817_v29 }
  0xcc   : > { %1796 = vmatpush2.bf16.msra.mxu1 %v2814_v28  ;;  %1826 = vmatprep.subr.bf16.mxu0 %v2825_v31 }
  0xcd   : > { %1797 = vmatprep.subr.bf16.mxu1 %v2822_v30 }
  0xce   : > { %1759 = vmatmul.mubr.bf16.vlgmr.msra.gmra.mxu0 %v3138_v14  ;;  %v2832_v14 = vld [vmem:[%s3662_s3 + $0x30] sm:$0xff]  }
  0xcf   : > { %1827 = vmatpush1.bf16.msra.mxu0 %v2823_v33  ;;  %1844 = vmatprep.mubr.bf16.mxu0 %v2862_v22 }
  0xd0   : > { %1798 = vmatpush2.bf16.msra.mxu1 %v2820_v32  ;;  %2503 = vmatprep.subr.bf16.mxu0 %v2829_v35 }
  0xd1   : > { %1799 = vmatprep.subr.bf16.mxu1 %v2828_v34 }
  0xd4   : > { %1800 = vmatpush2.bf16.msra.mxu1 %v2826_v36 }
  0xd5   : > { %2134 = vmatprep.subr.bf16.mxu1 %v2862_v22 }
  0xd6   : > { %2471 = vmatmul.mubr.msk.bf16.vlgmr.msra.gmra.mxu0 %vm1507_vm0, %v3163_v24  ;;  %v2835_v24 = vld [vmem:[%s3662_s3 + $0x60] sm:$0xff]  }
  0xd7   : > { %1802 = vmatmul.mubr.bf16.vlgmr.msra.gmra.mxu1 %v3343_v27  ;;  %2504 = vmatpush3.bf16.msra.mxu0 %v2830_v37  ;;  %v2836_v27 = vld [vmem:[%s3662_s3 + $0x20] sm:$0xff]  }
  0xd8   : > { %2505 = vmatprep.subr.bf16.mxu0 %v2831_v38  ;;  %2135 = vmatpush1.bf16.msra.mxu1 %v2845_v41 }
  0xd9   : > { %2136 = vmatprep.subr.bf16.mxu1 %v2862_v22 }
  0xdb   : > { %2506 = vmatpush3.bf16.msra.mxu0 %v2832_v14 }
  0xdc   : > { %2507 = vmatprep.subr.bf16.mxu0 %v2833_v39  ;;  %2137 = vmatpush1.bf16.msra.mxu1 %v2846_v42 }
  0xdd   : > { %2138 = vmatprep.subr.bf16.mxu1 %v2862_v22 }
  0xdf   : > { %2508 = vmatpush3.bf16.msra.mxu0 %v2834_v40 }
  0xe0   : > { %2509 = vmatprep.subr.bf16.mxu0 %v2835_v24  ;;  %2139 = vmatpush1.bf16.msra.mxu1 %v2847_v44  ;;  %v521_v44 = vsub.s32 3, %v508_v59 }
  0xe1   : > { %2140 = vmatprep.subr.bf16.mxu1 %v2862_v22 }
  0xe3   : > { %2510 = vmatpush3.bf16.msra.mxu0 %v2836_v27 }
  0xe4   : > { %2511 = vmatprep.subr.bf16.mxu0 %v2837_v55  ;;  %2141 = vmatpush1.bf16.msra.mxu1 %v2848_v50 }
  0xe5   : > { %2142 = vmatprep.subr.bf16.mxu1 %v2862_v22 }
  0xe7   : > { %2512 = vmatpush3.bf16.msra.mxu0 %v2838_v43 }
  0xe8   : > { %2513 = vmatprep.subr.bf16.mxu0 %v2839_v13  ;;  %2143 = vmatpush1.bf16.msra.mxu1 %v2849_v51  ;;  %v517_v13 = vsub.s32 2, %v508_v59 }
  0xe9   : > { %2144 = vmatprep.subr.bf16.mxu1 %v2862_v22 }
  0xeb   : > { %2514 = vmatpush3.bf16.msra.mxu0 %v2840_v46 }
  0xec   : > { %2515 = vmatprep.subr.bf16.mxu0 %v2841_v47  ;;  %2145 = vmatpush1.bf16.msra.mxu1 %v2850_v52 }
  0xed   : > { %2146 = vmatprep.subr.bf16.mxu1 %v2862_v22 }
  0xef   : > { %2516 = vmatpush3.bf16.msra.mxu0 %v2842_v45 }
  0xf0   : > { %2517 = vmatprep.subr.bf16.mxu0 %v2843_v48  ;;  %2147 = vmatpush1.bf16.msra.mxu1 %v2851_v53  ;;  %v518_v48 = vrot.slane %v505_v1, %v517_v13 }
  0xf1   : > { %2148 = vmatprep.subr.bf16.mxu1 %v2862_v22 }
  0xf3   : > { %2518 = vmatpush3.bf16.msra.mxu0 %v2844_v49  ;;  %v522_v49 = vrot.slane %v505_v1, %v521_v44 }
  0xf4   : > { %2149 = vmatpush1.bf16.msra.mxu1 %v2852_v54 }
  0xf5   : > { %2164 = vmatprep.subr.bf16.mxu1 %v2862_v22  ;;  %v514_v22 = vrot.slane %v505_v1, %v513_v63 }
  0xf8   : > { %2165 = vmatpush2.bf16.msra.mxu1 %v2853_v56 }
 0x10e   : > { %v1545_v61 = vpop.f32.mrf.mxu0 }
 0x10f   : > { %v1588_v58 = vpop.f32.mrf.mxu1  ;;  %v1546_v6 = vadd.f32 %v1545_v61, %v510_v3 }
 0x110   : > { %v1547_v2 = vpop.f32.mrf.mxu0 }
 0x111   : > { %v1590_v60 = vpop.f32.mrf.mxu1  ;;  %v1548_v7 = vadd.f32 %v1547_v2, %v514_v22  ;;  %v1589_v12 = vadd.f32 %v1588_v58, %v1546_v6 }
 0x112   : > { %v1549_v5 = vpop.f32.mrf.mxu0 }
 0x113   : > { %v1592_v0 = vpop.f32.mrf.mxu1  ;;  %v1550_v10 = vadd.f32 %v1549_v5, %v510_v3  ;;  %v1591_v15 = vadd.f32 %v1590_v60, %v1548_v7 }
 0x114   : > { %v1551_v9 = vpop.f32.mrf.mxu0 }
 0x115   : > { %v1594_v4 = vpop.f32.mrf.mxu1  ;;  %v1552_v17 = vadd.f32 %v1551_v9, %v514_v22  ;;  %v1593_v19 = vadd.f32 %v1592_v0, %v1550_v10 }
 0x117   : > { %v1674_v8 = vpop.f32.mrf.mxu1  ;;  %v1595_v28 = vadd.f32 %v1594_v4, %v1552_v17 }
 0x119   : > { %v1676_v16 = vpop.f32.mrf.mxu1 }
 0x11b   : > { %v1678_v25 = vpop.f32.mrf.mxu1 }
 0x11d   : > { %v1680_v34 = vpop.f32.mrf.mxu1 }
 0x14e   : > { %v1631_v11 = vpop.f32.mrf.mxu0 }
 0x14f   : > { %v1632_v20 = vadd.f32 %v1631_v11, %v1589_v12 }
 0x150   : > { %v1633_v18 = vpop.f32.mrf.mxu0 }
 0x151   : > { %v1634_v21 = vadd.f32 %v1633_v18, %v1591_v15  ;;  %v1675_v31 = vadd.f32 %v1674_v8, %v1632_v20 }
 0x152   : > { %v1635_v23 = vpop.f32.mrf.mxu0 }
 0x153   : > { %v1636_v26 = vadd.f32 %v1635_v23, %v1593_v19  ;;  %v1677_v29 = vadd.f32 %v1676_v16, %v1634_v21  ;;  %v1863_v38 = vmul.f32 0.2, %v1675_v31  ;;  %vm1855_vm3 = vcmp.gt.f32.partialorder %v1675_v31, 0.0 }
 0x154   : > { %v1637_v30 = vpop.f32.mrf.mxu0 }
 0x155   : > { %v1679_v32 = vadd.f32 %v1678_v25, %v1636_v26  ;;  %v1638_v33 = vadd.f32 %v1637_v30, %v1595_v28  ;;  %v1864_v36 = vmul.f32 0.2, %v1677_v29  ;;  %vm1856_vm2 = vcmp.gt.f32.partialorder %v1677_v29, 0.0 }
 0x156   : > { %v1871_v27 = vsel %vm1855_vm3, %v1675_v31, %v1863_v38 }
 0x157   : > { %v1867_v35 = vmul.f32 0.2, %v1679_v32  ;;  %vm1859_vm1 = vcmp.gt.f32.partialorder %v1679_v32, 0.0  ;;  %v1681_v37 = vadd.f32 %v1680_v34, %v1638_v33  ;;  %v1872_v40 = vsel %vm1856_vm2, %v1677_v29, %v1864_v36  ;;  %v1717_v42 = vpop.f32.mrf.mxu1  ;;  %v2472_v33 = vld [vmem:[%s3663_s4] ss:$0 sm:$0xff] }
 0x158   : > { %v1718_v53 = vadd.f32 %v1717_v42, %v518_v48 }
 0x159   : > { %vm1860_vm4 = vcmp.gt.f32.partialorder %v1681_v37, 0.0  ;;  %v1868_v14 = vmul.f32 0.2, %v1681_v37  ;;  %v1875_v39 = vsel %vm1859_vm1, %v1679_v32, %v1867_v35  ;;  %v1719_v43 = vpop.f32.mrf.mxu1 }
 0x15a   : > { %v1879_v41 = vpack.c.bf16 %v1875_v39, %v1871_v27  ;;  %v1720_v54 = vadd.f32 %v1719_v43, %v522_v49 }
 0x15b   : > { %v1876_v24 = vsel %vm1860_vm4, %v1681_v37, %v1868_v14  ;;  %v1721_v47 = vpop.f32.mrf.mxu1 }
 0x15c   : > { %v1880_v55 = vpack.c.bf16 %v1876_v24, %v1872_v40  ;;  %v1722_v58 = vadd.f32 %v1721_v47, %v518_v48  ;;  %v2499_v40 = vld [vmem:[%s3664_s5] ss:$0 sm:$0xff] }
 0x15d   : > { %v1723_v51 = vpop.f32.mrf.mxu1 }
 0x15e   : > { %2125 = vmatprep.mubr.bf16.mxu0 %v1880_v55  ;;  %v1724_v3 = vadd.f32 %v1723_v51, %v522_v49 }
 0x15f   : > { %2126 = vmatmul.mubr.bf16.vlgmr.msra.gmra.mxu0 %v1879_v41 }
 0x18e   : > { %v1760_v46 = vpop.f32.mrf.mxu0 }
 0x18f   : > { %v1761_v60 = vadd.f32 %v1760_v46, %v1718_v53 }
 0x190   : > { %v1762_v45 = vpop.f32.mrf.mxu0 }
 0x191   : > { %v1763_v61 = vadd.f32 %v1762_v45, %v1720_v54  ;;  %v2500_v45 = vld [vmem:[#allocation2] ss:$0 sm:$0xff] }
 0x192   : > { %v1764_v50 = vpop.f32.mrf.mxu0 }
 0x193   : > { %v1765_v0 = vadd.f32 %v1764_v50, %v1722_v58 }
 0x194   : > { %v1766_v52 = vpop.f32.mrf.mxu0 }
 0x195   : > { %v1767_v1 = vadd.f32 %v1766_v52, %v1724_v3 }
 0x196   : > { %v1846_v57 = vpop.f32.mrf.mxu0 }
 0x197   : > { %v1803_v56 = vpop.f32.mrf.mxu1 }
 0x198   : > { %v1848_v63 = vpop.f32.mrf.mxu0  ;;  %v1804_v2 = vadd.f32 %v1803_v56, %v1761_v60 }
 0x199   : > { %v1805_v62 = vpop.f32.mrf.mxu1 }
 0x19a   : > { %v1806_v59 = vadd.f32 %v1805_v62, %v1763_v61  ;;  %v1850_v4 = vpop.f32.mrf.mxu0  ;;  %v1847_v8 = vadd.f32 %v1846_v57, %v1804_v2 }
 0x19b   : > { %v1807_v22 = vpop.f32.mrf.mxu1 }
 0x19c   : > { %v1808_v5 = vadd.f32 %v1807_v22, %v1765_v0  ;;  %v1849_v6 = vadd.f32 %v1848_v63, %v1806_v59  ;;  %v1852_v10 = vpop.f32.mrf.mxu0  ;;  %v1865_v17 = vmul.f32 0.2, %v1847_v8  ;;  %vm1857_vm7 = vcmp.gt.f32.partialorder %v1847_v8, 0.0 }
 0x19d   : > { %v1809_v7 = vpop.f32.mrf.mxu1 }
 0x19e   : > { %v1851_v9 = vadd.f32 %v1850_v4, %v1808_v5  ;;  %v1810_v11 = vadd.f32 %v1809_v7, %v1767_v1  ;;  %v1866_v15 = vmul.f32 0.2, %v1849_v6  ;;  %vm1858_vm6 = vcmp.gt.f32.partialorder %v1849_v6, 0.0 }
 0x19f   : > { %v1873_v23 = vsel %vm1857_vm7, %v1847_v8, %v1865_v17 }
 0x1a0   : > { %v1869_v12 = vmul.f32 0.2, %v1851_v9  ;;  %vm1861_vm5 = vcmp.gt.f32.partialorder %v1851_v9, 0.0  ;;  %v1853_v16 = vadd.f32 %v1852_v10, %v1810_v11  ;;  %v1874_v20 = vsel %vm1858_vm6, %v1849_v6, %v1866_v15 }
 0x1a2   : > { %vm1862_vm8 = vcmp.gt.f32.partialorder %v1853_v16, 0.0  ;;  %v1870_v18 = vmul.f32 0.2, %v1853_v16  ;;  %v1877_v19 = vsel %vm1861_vm5, %v1851_v9, %v1869_v12 }
 0x1a3   : > { %v1881_v26 = vpack.c.bf16 %v1877_v19, %v1873_v23 }
 0x1a4   : > { %v1878_v21 = vsel %vm1862_vm8, %v1853_v16, %v1870_v18 }
 0x1a5   : > { %v1882_v25 = vpack.c.bf16 %v1878_v21, %v1874_v20 }
 0x1a7   : > { %2498 = vmatprep.mubr.msk.bf16.mxu1 %vm1507_vm0, %v1882_v25 }
 0x1a8   : > { %2167 = vmatmul.mubr.bf16.vlgmr.msra.gmra.mxu1 %v1881_v26 }
 0x21f   : > { %v2519_v28 = vpop.f32.mrf.mxu0 }
 0x221   : > { %v2520_v29 = vpop.f32.mrf.mxu0 }
 0x222   : > { %v2521_v31 = vadd.f32 %v2520_v29, %v2519_v28 }
 0x223   : > { %v2522_v30 = vpop.f32.mrf.mxu0 }
 0x224   : > { %v2128_v35 = vadd.f32 %v2521_v31, %v2472_v33 }
 0x225   : > { %v2523_v32 = vpop.f32.mrf.mxu0 }
 0x226   : > { %v2524_v34 = vadd.f32 %v2523_v32, %v2522_v30 }
 0x228   : > { %v2131_v39 = vadd.f32 %v2524_v34, %v2472_v33 }
 0x268   : > { %v2168_v36 = vpop.f32.mrf.mxu1 }
 0x269   : > { %v2169_v37 = vadd.f32 %v2168_v36, %v2128_v35 }
 0x26a   : > { %v2170_v38 = vpop.f32.mrf.mxu1 }
 0x26b   : > { %v2177_v14 = vmul.f32 0.2, %v2169_v37  ;;  %vm2175_vm9 = vcmp.gt.f32.partialorder %v2169_v37, 0.0 }
 0x26c   : > { %v2171_v24 = vpop.f32.mrf.mxu1 }
 0x26d   : > { %v2172_v27 = vadd.f32 %v2171_v24, %v2131_v39  ;;  %v2179_v55 = vsel %vm2175_vm9, %v2169_v37, %v2177_v14 }
 0x26e   : > { %v2173_v41 = vpop.f32.mrf.mxu1  ;;  %v2188_v42 = vmul.f32 %v2499_v40, %v2179_v55 }
 0x26f   : > { %vm2176_vm11 = vcmp.gt.f32.partialorder %v2172_v27, 0.0  ;;  %v2178_v43 = vmul.f32 0.2, %v2172_v27 }
 0x270   : > { %v2191_v13 = vsel %vm2190_vm10, %v2188_v42, 0.0 }
 0x271   : > { %2192 = vadd.xlane.f32.xlu0 %v2191_v13  ;;  %v2180_v44 = vsel %vm2176_vm11, %v2172_v27, %v2178_v43 }
 0x272   : > { %v2189_v46 = vmul.f32 %v2499_v40, %v2180_v44 }
 0x274   : > { %v2194_v47 = vsel %vm2190_vm10, %v2189_v46, 0.0 }
 0x275   : > { %2195 = vadd.xlane.f32.xlu0 %v2194_v47 }
 0x2fa   : > { %v2193_v48 = vpop.xlane.xlu0 %2192 }
 0x2fb   : > { %v2204_v49 = vadd.f32 %v2500_v45, %v2193_v48 }
 0x2fd   : > { %2207 = vst.msk [vmem:[%s285_s27] sm:$0xff] %vm2206_vm12, %v2204_v49 }
 0x2fe   : > { %v2196_v50 = vpop.xlane.xlu0 %2195 }
 0x2ff   : > { %v2205_v51 = vadd.f32 %v2500_v45, %v2196_v50 }
 0x301   : > { %2208 = vst.msk [vmem:[%s285_s27 + $0x8] sm:$0xff] %vm2206_vm12, %v2205_v51 }
 0x302 PF: > { %s19_s26 = sadd.s32 1, %s2860_s26  }
 0x303   : > { %p16_p4 = scmp.ge.s32.totalorder %s19_s26, 4  }
 0x305   :  { %18 = sbr.rel (!%p16_p4) target bundleno = 3 (0x3), region = 78 }

</bundles_post_ra>
